<compile_context>
chip_gen: v7x
topology: tpu7x:2x2x1
jax: 0.10.0
libtpu: 0.0.40
codegen_flags: <defaults>
</compile_context>

<pallas_src>
import functools

import jax
import jax.numpy as jnp
from jax.experimental import pallas as pl
from jax.experimental.pallas import tpu as pltpu

SMOOTHING = 0.1


def _ls_ce_kernel(x_ref, t_ref, out_ref, *, n_valid, n_classes, smoothing,
                  use_mxu_rowsum):
    """Fused label-smoothing CE for one (TILE_N, C) logits tile.

    Writes this tile's partial loss sum (padded rows excluded) into element
    [0, 0] of a lane-dense (8, 128) output block (zeros elsewhere).
    """
    confidence = 1.0 - smoothing
    base_w = smoothing / n_classes        # global class count, not tile width

    xf = x_ref[...].astype(jnp.float32)   # (TN, C) f32 math; native dtype in HBM
    t = t_ref[...]                        # (TN, 1) int32
    tn, c = xf.shape

    # Row-wise logsumexp pieces (no (TN, C) log-probs tensor materialized).
    m = jnp.max(xf, axis=1, keepdims=True)          # (TN, 1)   XLU
    e = jnp.exp(xf - m)                             # (TN, C)   EUP

    if use_mxu_rowsum:
        # Route the two big lane reductions through the otherwise-idle MXU.
        ones = jnp.ones((c, 1), jnp.float32)
        sum_exp = jnp.dot(e, ones, preferred_element_type=jnp.float32)
        sum_x = jnp.dot(xf, ones, preferred_element_type=jnp.float32)
    else:
        sum_exp = jnp.sum(e, axis=1, keepdims=True)     # (TN, 1)
        sum_x = jnp.sum(xf, axis=1, keepdims=True)      # (TN, 1)

    lse = m + jnp.log(sum_exp)                          # (TN, 1)

    # x[target] via a broadcast compare against a (1, C) class-index iota.
    col = jax.lax.broadcasted_iota(jnp.int32, (1, c), 1)
    xt = jnp.sum(jnp.where(col == t, xf, 0.0), axis=1, keepdims=True)  # (TN,1)

    # sum(w) == 1 fusion:  loss = lse - (s/C)*sum(x) - confidence*x[target]
    loss = lse - base_w * sum_x - confidence * xt       # (TN, 1)

    # Mask padded tail rows with a SELECT (garbage/NaN must not propagate).
    row = (pl.program_id(0) * tn
           + jax.lax.broadcasted_iota(jnp.int32, (tn, 1), 0))
    loss = jnp.where(row < n_valid, loss, 0.0)

    tile_sum = jnp.sum(loss)                             # scalar partial sum

    # Lane-dense, (8,128)-aligned output block: partial sum at [0,0], zeros
    # elsewhere -> single full unmasked vector store.
    r8 = jax.lax.broadcasted_iota(jnp.int32, (8, 128), 0)
    c128 = jax.lax.broadcasted_iota(jnp.int32, (8, 128), 1)
    out_ref[...] = jnp.where((r8 == 0) & (c128 == 0), tile_sum, 0.0)


def _vmem_budget_bytes():
    """Generation-aware scoped-VMEM budget for this kernel."""
    try:
        cap = int(pltpu.get_tpu_info().vmem_capacity_bytes)
    except Exception:
        cap = 64 * 1024 * 1024            # conservative: assume v7x-sized VMEM
    if cap >= 128 * 1024 * 1024:          # v5e / v6e
        return 96 * 1024 * 1024
    return min(48 * 1024 * 1024, (cap * 3) // 4)   # v7x / unknown


def _choose_tile_n(n, c, itemsize, vmem_budget):
    """Largest sublane-aligned row tile whose real working set fits the budget.

    Real per-tile VMEM ~= 2 * native-dtype input block (double buffering)
                        + ~4 live (TILE_N, C) f32 temporaries in the body.
    """
    n8 = ((n + 7) // 8) * 8
    per_row = 2 * c * itemsize + 4 * c * 4
    headroom = 4 * 1024 * 1024            # output slab, targets, misc scratch
    tile = max(0, vmem_budget - headroom) // max(1, per_row)
    tile = max(8, min(4096, (tile // 8) * 8))
    return min(tile, n8)


def label_smoothing_cross_entropy(x, target, smoothing=SMOOTHING):
    """x: (N, C) float logits (native dtype, no upcast in HBM),
    target: (N,) int labels. Returns scalar f32 mean loss."""
    n, c = x.shape
    itemsize = jnp.dtype(x.dtype).itemsize

    budget = _vmem_budget_bytes()
    tile_n = _choose_tile_n(n, c, itemsize, budget)
    num_tiles = pl.cdiv(n, tile_n)

    t2d = target.astype(jnp.int32).reshape(n, 1)

    # MXU row-sum offload only when C maps cleanly onto MXU lanes.
    use_mxu = (c >= 128) and (c % 128 == 0)

    # vmem_limit from the f32 working set (not the native block alone),
    # capped at the generation-aware budget.
    blk_native = tile_n * c * itemsize
    blk_f32 = tile_n * c * 4
    vmem_limit = 2 * blk_native + 4 * blk_f32 + (4 << 20)
    vmem_limit = int(min(budget, max(16 << 20, vmem_limit)))

    partial = pl.pallas_call(
        functools.partial(_ls_ce_kernel, n_valid=n, n_classes=c,
                          smoothing=smoothing, use_mxu_rowsum=use_mxu),
        out_shape=jax.ShapeDtypeStruct((num_tiles * 8, 128), jnp.float32),
        grid=(num_tiles,),
        in_specs=[
            pl.BlockSpec((tile_n, c), lambda i: (i, 0)),   # logits row-tile
            pl.BlockSpec((tile_n, 1), lambda i: (i, 0)),   # targets row-tile
        ],
        out_specs=pl.BlockSpec((8, 128), lambda i: (i, 0)),  # partial-sum slab
        compiler_params=pltpu.CompilerParams(
            dimension_semantics=("parallel",),
            vmem_limit_bytes=vmem_limit,
        ),
    )(x, t2d)

    # Finish the batch mean outside the kernel (non-[0,0] slots are exact 0).
    return jnp.sum(partial) / n


def _reference(x, target, smoothing=SMOOTHING):
    # pure-JAX reference mirroring the PyTorch forward
    confidence = 1.0 - smoothing
    logprobs = jax.nn.log_softmax(x.astype(jnp.float32), axis=1)
    nll_loss = -jnp.take_along_axis(logprobs, target[:, None], axis=1)[:, 0]
    smooth_loss = -jnp.mean(logprobs, axis=1)
    loss = confidence * nll_loss + smoothing * smooth_loss
    return jnp.mean(loss)


if __name__ == "__main__":
    key = jax.random.PRNGKey(0)
    kx, kt = jax.random.split(key)

    # 1) Small f32 case consistent with the module (batch of logits over classes).
    N, C = 8, 32
    x = jax.random.normal(kx, (N, C), dtype=jnp.float32)
    target = jax.random.randint(kt, (N,), 0, C, dtype=jnp.int32)
    loss = label_smoothing_cross_entropy(x, target)
    jax.block_until_ready(loss)
    ref = _reference(x, target)
    assert jnp.allclose(loss, ref, atol=1e-5, rtol=1e-5), (loss, ref)

    # 2) Ragged-tail + bf16 path: N not a multiple of the row tile, logits kept
    #    bf16 in HBM and cast to f32 inside the kernel.
    N2, C2 = 13, 160
    x2 = jax.random.normal(kx, (N2, C2), dtype=jnp.float32).astype(jnp.bfloat16)
    t2 = jax.random.randint(kt, (N2,), 0, C2, dtype=jnp.int32)
    loss2 = label_smoothing_cross_entropy(x2, t2)
    jax.block_until_ready(loss2)
    ref2 = _reference(x2, t2)
    assert jnp.allclose(loss2, ref2, atol=1e-3, rtol=1e-3), (loss2, ref2)

    # 3) Multi-tile + ragged last tile: exercises the per-tile partial-sum slab
    #    at block indices > 0 and the padded-row select mask.
    N3, C3 = 4104, 32
    x3 = jax.random.normal(kx, (N3, C3), dtype=jnp.float32)
    t3 = jax.random.randint(kt, (N3,), 0, C3, dtype=jnp.int32)
    loss3 = label_smoothing_cross_entropy(x3, t3)
    jax.block_until_ready(loss3)
    ref3 = _reference(x3, t3)
    assert jnp.allclose(loss3, ref3, atol=1e-4, rtol=1e-4), (loss3, ref3)

    print("KERNEL_OK")
</pallas_src>

<mosaic_0001>
module attributes {stable_mosaic.version = 11 : i64} {
  func.func @_ls_ce_kernel(%arg0: i32, %arg1: memref<8x32xf32, #tpu.memory_space<vmem>>, %arg2: memref<8x1xi32, #tpu.memory_space<vmem>>, %arg3: memref<8x128xf32, #tpu.memory_space<vmem>>) attributes {dimension_semantics = [#tpu.dimension_semantics<parallel>], iteration_bounds = array<i64: 1>, scalar_prefetch = 0 : i64, scratch_operands = 0 : i64, tpu.core_type = #tpu.core_type<tc>, window_params = [{transform_indices = @transform_0, window_bounds = array<i64: 8, 32>}, {transform_indices = @transform_1, window_bounds = array<i64: 8, 1>}, {transform_indices = @transform_2, window_bounds = array<i64: 8, 128>}]} {
    %c0 = arith.constant 0 : index
    %c0_0 = arith.constant 0 : index
    %0 = vector.load %arg1[%c0, %c0_0] : memref<8x32xf32, #tpu.memory_space<vmem>>, vector<8x32xf32>
    %c0_1 = arith.constant 0 : index
    %c0_2 = arith.constant 0 : index
    %1 = vector.load %arg2[%c0_1, %c0_2] : memref<8x1xi32, #tpu.memory_space<vmem>>, vector<8x1xi32>
    %cst = arith.constant dense<0xFF800000> : vector<8xf32>
    %2 = vector.multi_reduction <maximumf>, %0, %cst [1] : vector<8x32xf32> to vector<8xf32>
    %3 = vector.shape_cast %2 : vector<8xf32> to vector<8x1xf32>
    %4 = vector.broadcast %3 : vector<8x1xf32> to vector<8x32xf32>
    %5 = arith.subf %0, %4 : vector<8x32xf32>
    %6 = math.exp %5 : vector<8x32xf32>
    %cst_3 = arith.constant dense<0.000000e+00> : vector<8xf32>
    %7 = vector.multi_reduction <add>, %6, %cst_3 [1] : vector<8x32xf32> to vector<8xf32>
    %8 = vector.shape_cast %7 : vector<8xf32> to vector<8x1xf32>
    %cst_4 = arith.constant dense<0.000000e+00> : vector<8xf32>
    %9 = vector.multi_reduction <add>, %0, %cst_4 [1] : vector<8x32xf32> to vector<8xf32>
    %10 = vector.shape_cast %9 : vector<8xf32> to vector<8x1xf32>
    %11 = math.log %8 : vector<8x1xf32>
    %12 = arith.addf %3, %11 : vector<8x1xf32>
    %13 = tpu.iota {dimensions = array<i32: 1>} : vector<1x32xi32>
    %14 = vector.broadcast %13 : vector<1x32xi32> to vector<8x32xi32>
    %15 = vector.broadcast %1 : vector<8x1xi32> to vector<8x32xi32>
    %16 = arith.cmpi eq, %14, %15 : vector<8x32xi32>
    %cst_5 = arith.constant 0.000000e+00 : f32
    %17 = vector.broadcast %cst_5 : f32 to vector<8x32xf32>
    %18 = arith.select %16, %0, %17 : vector<8x32xi1>, vector<8x32xf32>
    %cst_6 = arith.constant dense<0.000000e+00> : vector<8xf32>
    %19 = vector.multi_reduction <add>, %18, %cst_6 [1] : vector<8x32xf32> to vector<8xf32>
    %20 = vector.shape_cast %19 : vector<8xf32> to vector<8x1xf32>
    %cst_7 = arith.constant 3.125000e-03 : f32
    %21 = vector.broadcast %cst_7 : f32 to vector<8x1xf32>
    %22 = arith.mulf %21, %10 : vector<8x1xf32>
    %23 = arith.subf %12, %22 : vector<8x1xf32>
    %cst_8 = arith.constant 0.899999976 : f32
    %24 = vector.broadcast %cst_8 : f32 to vector<8x1xf32>
    %25 = arith.mulf %24, %20 : vector<8x1xf32>
    %26 = arith.subf %23, %25 : vector<8x1xf32>
    %c8_i32 = arith.constant 8 : i32
    %27 = arith.muli %arg0, %c8_i32 : i32
    %28 = tpu.iota {dimensions = array<i32: 0>} : vector<8x1xi32>
    %29 = vector.broadcast %27 : i32 to vector<8x1xi32>
    %30 = arith.addi %29, %28 : vector<8x1xi32>
    %c8_i32_9 = arith.constant 8 : i32
    %31 = vector.broadcast %c8_i32_9 : i32 to vector<8x1xi32>
    %32 = arith.cmpi slt, %30, %31 : vector<8x1xi32>
    %cst_10 = arith.constant 0.000000e+00 : f32
    %33 = vector.broadcast %cst_10 : f32 to vector<8x1xf32>
    %34 = arith.select %32, %26, %33 : vector<8x1xi1>, vector<8x1xf32>
    %35 = vector.shape_cast %34 : vector<8x1xf32> to vector<1x8x1xf32>
    %cst_11 = arith.constant dense<0.000000e+00> : vector<1xf32>
    %36 = vector.multi_reduction <add>, %35, %cst_11 [1, 2] : vector<1x8x1xf32> to vector<1xf32>
    %37 = vector.shape_cast %36 : vector<1xf32> to vector<1x1x1xf32>
    %38 = vector.extract %37[0, 0, 0] : f32 from vector<1x1x1xf32>
    %39 = tpu.iota {dimensions = array<i32: 0>} : vector<8x128xi32>
    %40 = tpu.iota {dimensions = array<i32: 1>} : vector<8x128xi32>
    %c0_i32 = arith.constant 0 : i32
    %41 = vector.broadcast %c0_i32 : i32 to vector<8x128xi32>
    %42 = arith.cmpi eq, %39, %41 : vector<8x128xi32>
    %c0_i32_12 = arith.constant 0 : i32
    %43 = vector.broadcast %c0_i32_12 : i32 to vector<8x128xi32>
    %44 = arith.cmpi eq, %40, %43 : vector<8x128xi32>
    %45 = arith.andi %42, %44 : vector<8x128xi1>
    %cst_13 = arith.constant 0.000000e+00 : f32
    %46 = vector.broadcast %38 : f32 to vector<8x128xf32>
    %47 = vector.broadcast %cst_13 : f32 to vector<8x128xf32>
    %48 = arith.select %45, %46, %47 : vector<8x128xi1>, vector<8x128xf32>
    %c0_14 = arith.constant 0 : index
    %c0_15 = arith.constant 0 : index
    %49 = vector.load %arg3[%c0_14, %c0_15] : memref<8x128xf32, #tpu.memory_space<vmem>>, vector<8x128xf32>
    tpu.vector_store %arg3[%c0_14, %c0_15], %48 {strides = array<i32>} : memref<8x128xf32, #tpu.memory_space<vmem>>, vector<8x128xf32>,
    return
  }
  func.func @transform_0(%arg0: i32) -> (i32, i32) {
    %c0_i32 = arith.constant 0 : i32
    %c0_i32_0 = arith.constant 0 : i32
    return %arg0, %c0_i32 : i32, i32
  }
  func.func @transform_1(%arg0: i32) -> (i32, i32) {
    %c0_i32 = arith.constant 0 : i32
    %c0_i32_0 = arith.constant 0 : i32
    return %arg0, %c0_i32 : i32, i32
  }
  func.func @transform_2(%arg0: i32) -> (i32, i32) {
    %c0_i32 = arith.constant 0 : i32
    %c0_i32_0 = arith.constant 0 : i32
    return %arg0, %c0_i32 : i32, i32
  }
}

</mosaic_0001>

<bundles_post_ra>
// kernel: tpu_custom_call.1
= control target key start
LH: loop header
LB: loop body
LE: loop exit
PB: predicated region body
PF: predicated region fallthrough
CT: control target
= control target key end

     0   :  { %vm14_vm0 = vcmask 261120   ;;  %s154_s0 = inlined_call_operand.vmem [shape: f32[8,32], index: 0, kind: input, shape index: {}]   ;;  %s155_s1 = inlined_call_operand.vmem [shape: s32[8,1], index: 1, kind: input, shape index: {}]   ;;  %s156_s2 = inlined_call_operand.hbm [shape: f32[8,128], index: 2, kind: output, shape index: {}]  }
   0x1   :  { %v12_v0 = vld [vmem:[%s154_s0] sm:$0xff] }
   0x2   :  { %7 = vsyncpa [#allocation3], 0  ;;  %v15_v1 = vsel %vm14_vm0, %v12_v0, -inf  ;;  %v115_v2 = vmov 0   ;;  %v13_v3 = vld [vmem:[%s155_s1] sm:$0xff]  ;;  %v30_v7 = vlaneseq  ;;  %v24_v12 = vsel %vm14_vm0, %v12_v0, 0.0 }
   0x3   :  { %86 = vset.pattern.permute.xlu0 %v115_v2  ;;  %vm51_vm2 = vcmask 7168   ;;  %s116_s0 = smov [#allocation2]  }
   0x4   :  { %16 = vmax.xlane.f32.xlu0 %v15_v1  ;;  %v31_v8 = vand.u32 127, %v30_v7  ;;  %v46_v33 = vshrl.u32 %v30_v7, 7  ;;  %s74_s1 = sshll.u32 %s116_s0, 4  ;;  %s75_s1 = int_to_ptr.vmem [resolvable:$true] %s74_s1 }
   0x5   :  { %s91_s14 = scalar_lea.vmem %s75_s1, 128  ;;  %p96_p1 = scmp.lt.s32.totalorder %s75_s1, %s75_s1 }
   0x6   :  { %vm62_vm3 = vcmp.eq.s32.totalorder %v46_v33, 0  ;;  %vm63_vm4 = vcmp.eq.s32.totalorder %v31_v8, 0  ;;  %p92_p0 = scmp.ne.s32.totalorder %s75_s1, %s91_s14  ;;  %p97_p2 = scmp.lt.s32.totalorder %s91_s14, %s91_s14 }
   0x7   :  { %vm64_vm5 = vmand %vm62_vm3, %vm63_vm4 }
   0x8   :  { %p98_p3 = por %p97_p2, %p96_p1 }
   0xa   :  { %p99_p4 = pnand %p98_p3, %p92_p0 }
  0x1a   :  { %33 = vperm.xlu0 %86, %v13_v3  }
  0x91   :  { %v17_v4 = vpop.xlane.xlu0 %16 }
  0x92   :  { %v18_v5 = vsub.f32 %v12_v0, %v17_v4 }
  0x94   :  { %v19_v6 = vmul.f32 1.442695, %v18_v5 }
  0x96   :  { %87 = vpow2.f32 %v19_v6 }
  0x99   :  { %v34_v9 = vpop.permute.xlu0 %33 }
  0x9a   :  { %vm35_vm1 = vcmp.eq.s32.totalorder %v31_v8, %v34_v9 }
  0x9b   :  { %v36_v13 = vsel %vm35_vm1, %v12_v0, 0.0 }
  0x9c   :  { %v37_v14 = vsel %vm14_vm0, %v36_v13, 0.0 }
  0xa0   :  { %v88_v10 = vpop.eup %87 }
  0xa1   :  { %v21_v11 = vsel %vm14_vm0, %v88_v10, 0.0 }
  0xa2   :  { %22 = vadd.xlane.f32.xlu1 %v21_v11 }
  0xa6   :  { %25 = vadd.xlane.f32.xlu1 %v24_v12 }
  0xaa   :  { %38 = vadd.xlane.f32.xlu1 %v37_v14 }
 0x12f   :  { %v23_v15 = vpop.xlane.xlu1 %22 }
 0x130   :  { %89 = vlog2.f32 %v23_v15 }
 0x133   :  { %v26_v16 = vpop.xlane.xlu1 %25 }
 0x134   :  { %v40_v21 = vmul.f32 0.003125, %v26_v16 }
 0x137   :  { %v39_v18 = vpop.xlane.xlu1 %38 }
 0x138   :  { %v42_v22 = vmul.f32 0.9, %v39_v18 }
 0x13a   :  { %v90_v17 = vpop.eup %89 }
 0x13b   :  { %v28_v19 = vmul.f32 0.6931472, %v90_v17 }
 0x13d   :  { %v29_v20 = vadd.f32 %v28_v19, %v17_v4 }
 0x13f   :  { %v41_v23 = vsub.f32 %v29_v20, %v40_v21 }
 0x141   :  { %v43_v24 = vsub.f32 %v41_v23, %v42_v22 }
 0x143   :  { %v52_v25 = vsel %vm51_vm2, %v43_v24, 0.0 }
 0x144   :  { %53 = vadd.xlane.f32.xlu1 %v52_v25 }
 0x1d1   :  { %v54_v26 = vpop.xlane.xlu1 %53 }
 0x1d2   :  { %v55_v27 = vrot.slane %v54_v26, 4 }
 0x1d4   :  { %v56_v28 = vadd.f32 %v55_v27, %v54_v26 }
 0x1d6   :  { %v57_v29 = vrot.slane %v56_v28, 2 }
 0x1d8   :  { %v58_v30 = vadd.f32 %v57_v29, %v56_v28 }
 0x1da   :  { %v59_v31 = vrot.slane %v58_v30, 1 }
 0x1dc   :  { %v60_v32 = vadd.f32 %v59_v31, %v58_v30 }
 0x1de   :  { %82 = vpush %v60_v32 }
 0x20f   :  { %s83_s13 = spop %82 }
 0x210   :  { %v65_v34 = vstv %s83_s13 }
 0x211   :  { %v66_v35 = vsel %vm64_vm5, %v65_v34, 0.0 }
 0x212   :  { %67 = vst [vmem:[#allocation2] sm:$0xff] %v66_v35 }
 0x213   :  { %102 = shalt.err (!%p99_p4)
}
 0x214   :  { %s103_s17 = scalar_lea.hbm %s156_s2, 128 }
 0x215   :  { %p104_p5 = scmp.ne.s32.totalorder %s156_s2, %s103_s17  ;;  %p107_p6 = scmp.lt.u32.totalorder %s103_s17, %s156_s2 }
 0x217   :  { %p109_p7 = pnand %p107_p6, %p104_p5 }
 0x219   :  { %112 = shalt.err (!%p109_p7)
}
 0x21a   :  { %77 = dma.vmem_to_hbm [thread:$0]  %s75_s1, 128, %s156_s2, [#allocation3]  }
 0x21b   :  { %113 = dma.done.wait [#allocation3], 128  }
 0x21c   :  { %114 = vsyncadd [#allocation3], 4294967168 }
 0x21d   :  { %81 = vsyncpa [#allocation3], 1 }

</bundles_post_ra>
